<compile_context>
chip_gen: v6e
topology: v6e:2x2x1
jax: 0.10.0
libtpu: 0.0.40
codegen_flags: <defaults>
</compile_context>

<pallas_src>
import functools

import jax
import jax.numpy as jnp
import numpy as np
from jax import lax
from jax.experimental import pallas as pl
from jax.experimental.pallas import tpu as pltpu


def _round_up(x, m):
    return (x + m - 1) // m * m


# ----------------------------------------------------------------------------
# Pallas kernel: one Conv2d((KH,1),(s,1),(pad,0)) layer (+ fused LeakyReLU)
# for a block of NB sequences.  Stride has already been folded into channels,
# so the kernel only ever does stride-1 taps.
# ----------------------------------------------------------------------------
def _conv_kernel_body(x_ref, w_ref, b_ref, *out_refs,
                      kh, h_out, nb, cin, apply_act, neg_slope):
    # x_ref: (NB, L, cin) f32   w_ref: (kh, cin, cout) bf16   b_ref: (1, cout) f32
    cout = w_ref.shape[-1]
    bias = b_ref[...]                                            # (1, cout) f32

    if cin == 1:
        # First layer (Cin == 1): pure-VPU broadcast multiply-accumulate, 3-D,
        # no reshapes.  Quantize x through bf16 so numerics match the bf16 MXU
        # path used by the other layers (and the reference).
        acc = jnp.broadcast_to(bias.reshape(1, 1, cout), (nb, h_out, cout))
        for k in range(kh):                                      # static unroll
            x_tap = x_ref[:, pl.ds(k, h_out), :]                 # (nb, h_out, 1)
            x_tap = x_tap.astype(jnp.bfloat16).astype(jnp.float32)
            w_k = w_ref[k].astype(jnp.float32).reshape(1, 1, cout)
            acc = acc + x_tap * w_k
        conv = acc
    else:
        m = nb * h_out
        acc = jnp.broadcast_to(bias, (m, cout))                  # bias-init acc
        for k in range(kh):                                      # static unroll
            x_tap = x_ref[:, pl.ds(k, h_out), :]                 # contiguous rows
            x_tap = x_tap.reshape(m, cin)                        # free: h_out % 8 == 0
            acc = acc + jnp.dot(x_tap.astype(jnp.bfloat16), w_ref[k],
                                preferred_element_type=jnp.float32)
        conv = acc.reshape(m // h_out, h_out, cout)              # (nb, h_out, cout)

    out_refs[0][...] = conv                                      # conv feature map
    if apply_act:                                                # LeakyReLU feature map
        out_refs[1][...] = jnp.where(conv > 0, conv, neg_slope * conv)


# ----------------------------------------------------------------------------
# NB (sequences per grid step) selection: largest divisor of N whose
# double-buffered working set fits the budget, keeping >= 2 grid steps.
# ----------------------------------------------------------------------------
def _choose_nb(n, rows_in, cin, rows_out, cout, kh, n_outs,
               vmem_budget_bytes=16 * 1024 * 1024):
    w_b = kh * _round_up(cin, 16) * _round_up(cout, 128) * 2     # bf16 weights
    best = 1
    for d in range(1, n + 1):
        if n % d:
            continue
        if n >= 2 and n // d < 2:                                # keep >=2 steps (v7x)
            continue
        x_b = d * _round_up(rows_in, 8) * _round_up(cin, 128) * 4
        o_b = n_outs * d * _round_up(rows_out, 8) * _round_up(cout, 128) * 4
        if 2 * (x_b + o_b) + 2 * w_b <= vmem_budget_bytes:       # double-buffered
            best = d
    return best


# ----------------------------------------------------------------------------
# One layer: Conv2d((KH,1),(stride,1),(pad,0)) [+ LeakyReLU] on x:(N, H, Cin).
# ----------------------------------------------------------------------------
def conv1d_period_layer(x, w, b, *, stride, pad, apply_act, neg_slope=0.1):
    """x: (N, H, Cin) f32; w: (KH, Cin, Cout); b: (Cout,).  Returns (conv, act|None),
    each (N, Hout, Cout) float32."""
    N, H, Cin = x.shape
    KH, _, Cout = w.shape
    s = stride
    Hp = H + 2 * pad
    Hout = (Hp - KH) // s + 1
    Hout_pad = _round_up(Hout, 8)                    # 8-aligned rows -> free flatten

    # ---- fold stride into the channel axis (phase decomposition) -------------
    kh_eff = -(-KH // s)                             # ceil(KH / s)
    cin_eff = s * Cin
    L = max(-(-Hp // s), Hout_pad + kh_eff - 1)      # folded rows the kernel needs
    total_rows = L * s
    xp = jnp.pad(x, ((0, 0), (pad, total_rows - H - pad), (0, 0)))
    x_eff = xp.reshape(N, L, cin_eff)                # f32; bf16 cast happens in-kernel

    w_pad = jnp.pad(w, ((0, kh_eff * s - KH), (0, 0), (0, 0)))   # zero phantom taps
    w_eff = w_pad.reshape(kh_eff, cin_eff, Cout).astype(jnp.bfloat16)
    b2 = b.reshape(1, Cout).astype(jnp.float32)

    n_outs = 2 if apply_act else 1
    NB = _choose_nb(N, L, cin_eff, Hout_pad, Cout, kh_eff, n_outs)

    kernel = functools.partial(
        _conv_kernel_body, kh=kh_eff, h_out=Hout_pad, nb=NB, cin=cin_eff,
        apply_act=apply_act, neg_slope=neg_slope)

    out_shape = tuple(jax.ShapeDtypeStruct((N, Hout_pad, Cout), jnp.float32)
                      for _ in range(n_outs))
    out_specs = tuple(pl.BlockSpec((NB, Hout_pad, Cout), lambda n: (n, 0, 0))
                      for _ in range(n_outs))

    flops = 2 * N * Hout_pad * kh_eff * cin_eff * Cout + 3 * N * Hout_pad * Cout
    bytes_accessed = (x_eff.size * 4 + w_eff.size * 2 + b2.size * 4
                      + n_outs * N * Hout_pad * Cout * 4)

    outs = pl.pallas_call(
        kernel,
        out_shape=out_shape,
        grid_spec=pltpu.PrefetchScalarGridSpec(
            num_scalar_prefetch=0,
            grid=(N // NB,),
            in_specs=[
                pl.BlockSpec((NB, L, cin_eff), lambda n: (n, 0, 0)),      # x block
                pl.BlockSpec((kh_eff, cin_eff, Cout), lambda n: (0, 0, 0)),  # weights
                pl.BlockSpec((1, Cout), lambda n: (0, 0)),                # bias
            ],
            out_specs=out_specs,
        ),
        compiler_params=pltpu.CompilerParams(
            dimension_semantics=("parallel",),
            vmem_limit_bytes=32 * 1024 * 1024),
        cost_estimate=pl.CostEstimate(
            flops=int(flops), transcendentals=0,
            bytes_accessed=int(bytes_accessed)),
    )(x_eff, w_eff, b2)

    conv = outs[0][:, :Hout, :]                      # drop 8-alignment pad rows
    act = outs[1][:, :Hout, :] if apply_act else None
    return conv, act


# ----------------------------------------------------------------------------
# Parameter init (deterministic, synthetic — no checkpoint loading)
# ----------------------------------------------------------------------------
def init_params(key, conv_channels, kernel_size, final_kernel=3):
    params = []
    in_ch = 1
    for ch in conv_channels:
        key, k1, k2 = jax.random.split(key, 3)
        scale = 1.0 / np.sqrt(kernel_size * in_ch)
        w = jax.random.normal(k1, (kernel_size, in_ch, ch), jnp.float32) * scale
        b = jax.random.normal(k2, (ch,), jnp.float32) * 0.01
        params.append((w, b))
        in_ch = ch
    key, k1, k2 = jax.random.split(key, 3)
    scale = 1.0 / np.sqrt(final_kernel * in_ch)
    w = jax.random.normal(k1, (final_kernel, in_ch, 1), jnp.float32) * scale
    b = jax.random.normal(k2, (1,), jnp.float32) * 0.01
    params.append((w, b))
    return params


# ----------------------------------------------------------------------------
# Forward pass mirroring PeriodDiscriminator.forward
# ----------------------------------------------------------------------------
def period_discriminator_forward(x, params, *, period, stride, padding=2):
    B, C, T = x.shape
    assert C == 1
    if T % period != 0:
        pad_len = period - T % period
        x = jnp.pad(x, ((0, 0), (0, 0), (0, pad_len)), mode="reflect")
        T = T + pad_len
    H, W = T // period, period
    x4 = x.reshape(B, C, H, W)                                   # == torch .view

    # kernel layout: (N = B*W, H, Cin=1)
    xk = jnp.transpose(x4[:, 0, :, :], (0, 2, 1)).reshape(B * W, H, 1)

    def to_nchw(y):                                              # (B*W,Ho,Co) -> (B,Co,Ho,W)
        Ho, Co = y.shape[1], y.shape[2]
        return jnp.transpose(y.reshape(B, W, Ho, Co), (0, 3, 2, 1))

    # NOTE: both conv and LeakyReLU feature maps are kept, matching the PyTorch
    # module which appends after every layer in self.model.
    features = []
    n_layers = len(params)
    for li, (w, b) in enumerate(params):
        is_last = li == n_layers - 1
        st = 1 if is_last else stride[li]
        pd = 1 if is_last else padding
        conv_out, act_out = conv1d_period_layer(
            xk, w, b, stride=st, pad=pd, apply_act=not is_last)
        features.append(to_nchw(conv_out))                       # Conv2d feature
        if not is_last:
            features.append(to_nchw(act_out))                    # LeakyReLU feature
            xk = act_out
        else:
            final = to_nchw(conv_out)                            # (B, 1, Hlast, W)
            features.append(final.reshape(B, -1))                # torch.flatten(x,1,-1)
    return features


# ----------------------------------------------------------------------------
# Pure-JAX (XLA) reference with the same bf16-input / f32-accumulate policy
# ----------------------------------------------------------------------------
def reference_forward(x, params, *, period, stride, padding=2):
    B, C, T = x.shape
    if T % period != 0:
        pad_len = period - T % period
        x = jnp.pad(x, ((0, 0), (0, 0), (0, pad_len)), mode="reflect")
        T = T + pad_len
    x4 = x.reshape(B, C, T // period, period)
    feats = []
    n = len(params)
    for li, (w, b) in enumerate(params):
        is_last = li == n - 1
        st = 1 if is_last else stride[li]
        pd = 1 if is_last else padding
        w_oihw = jnp.transpose(w, (2, 1, 0))[..., None]          # (Cout, Cin, KH, 1)
        y = lax.conv_general_dilated(
            x4.astype(jnp.bfloat16), w_oihw.astype(jnp.bfloat16),
            window_strides=(st, 1), padding=((pd, pd), (0, 0)),
            dimension_numbers=("NCHW", "OIHW", "NCHW"),
            preferred_element_type=jnp.float32) + b.reshape(1, -1, 1, 1)
        feats.append(y)
        if not is_last:
            x4 = jnp.where(y > 0, y, 0.1 * y)
            feats.append(x4)
        else:
            x4 = y
    feats.append(x4.reshape(B, -1))
    return feats


if __name__ == "__main__":
    key = jax.random.PRNGKey(0)
    kx, kp = jax.random.split(key)

    # small instantiation of the module (conv_channels / T scaled down)
    period = 4
    kernel_size = 5
    conv_channels = [32, 64, 128, 128, 128]
    stride = [1, 2, 2, 2, 2]
    padding = 2

    B, T = 2, 62                         # T % period != 0 exercises the reflect pad
    x = jax.random.normal(kx, (B, 1, T), jnp.float32)
    params = init_params(kp, conv_channels, kernel_size)

    feats = period_discriminator_forward(x, params, period=period,
                                         stride=stride, padding=padding)
    feats = jax.block_until_ready(feats)

    ref = reference_forward(x, params, period=period, stride=stride,
                            padding=padding)
    ref = jax.block_until_ready(ref)

    assert len(feats) == len(ref) == 2 * len(conv_channels) + 2
    for a, r in zip(feats, ref):
        np.testing.assert_allclose(np.asarray(a), np.asarray(r),
                                   rtol=1e-2, atol=1e-2)
    print("KERNEL_OK")
</pallas_src>

<mosaic_0001>
module attributes {stable_mosaic.version = 11 : i64} {
  func.func @_conv_kernel_body(%arg0: i32, %arg1: memref<4x20x1xf32, #tpu.memory_space<vmem>>, %arg2: memref<5x1x32xbf16, #tpu.memory_space<vmem>>, %arg3: memref<1x32xf32, #tpu.memory_space<vmem>>, %arg4: memref<4x16x32xf32, #tpu.memory_space<vmem>>, %arg5: memref<4x16x32xf32, #tpu.memory_space<vmem>>) attributes {dimension_semantics = [#tpu.dimension_semantics<parallel>], iteration_bounds = array<i64: 2>, scalar_prefetch = 0 : i64, scratch_operands = 0 : i64, tpu.core_type = #tpu.core_type<tc>, window_params = [{transform_indices = @transform_0, window_bounds = array<i64: 4, 20, 1>}, {pipeline_mode = #tpu.pipeline_mode<synchronous>, transform_indices = @transform_1, window_bounds = array<i64: 5, 1, 32>}, {pipeline_mode = #tpu.pipeline_mode<synchronous>, transform_indices = @transform_2, window_bounds = array<i64: 1, 32>}, {transform_indices = @transform_3, window_bounds = array<i64: 4, 16, 32>}, {transform_indices = @transform_4, window_bounds = array<i64: 4, 16, 32>}]} {
    %c0 = arith.constant 0 : index
    %c0_0 = arith.constant 0 : index
    %0 = vector.load %arg3[%c0, %c0_0] : memref<1x32xf32, #tpu.memory_space<vmem>>, vector<1x32xf32>
    %1 = vector.shape_cast %0 : vector<1x32xf32> to vector<1x1x32xf32>
    %2 = vector.shape_cast %1 : vector<1x1x32xf32> to vector<1x1x32xf32>
    %3 = vector.broadcast %2 : vector<1x1x32xf32> to vector<4x16x32xf32>
    %c0_1 = arith.constant 0 : index
    %c0_2 = arith.constant 0 : index
    %c0_3 = arith.constant 0 : index
    %4 = vector.load %arg1[%c0_1, %c0_2, %c0_3] : memref<4x20x1xf32, #tpu.memory_space<vmem>>, vector<4x16x1xf32>
    %5 = arith.truncf %4 : vector<4x16x1xf32> to vector<4x16x1xbf16>
    %6 = arith.extf %5 : vector<4x16x1xbf16> to vector<4x16x1xf32>
    %c0_4 = arith.constant 0 : index
    %c0_5 = arith.constant 0 : index
    %c0_6 = arith.constant 0 : index
    %7 = vector.load %arg2[%c0_4, %c0_5, %c0_6] : memref<5x1x32xbf16, #tpu.memory_space<vmem>>, vector<1x1x32xbf16>
    %8 = vector.shape_cast %7 : vector<1x1x32xbf16> to vector<1x32xbf16>
    %9 = arith.extf %8 : vector<1x32xbf16> to vector<1x32xf32>
    %10 = vector.shape_cast %9 : vector<1x32xf32> to vector<1x1x32xf32>
    %11 = vector.broadcast %6 : vector<4x16x1xf32> to vector<4x16x32xf32>
    %12 = vector.broadcast %10 : vector<1x1x32xf32> to vector<4x16x32xf32>
    %13 = arith.mulf %11, %12 : vector<4x16x32xf32>
    %14 = arith.addf %3, %13 : vector<4x16x32xf32>
    %c0_7 = arith.constant 0 : index
    %c1 = arith.constant 1 : index
    %c0_8 = arith.constant 0 : index
    %15 = vector.load %arg1[%c0_7, %c1, %c0_8] : memref<4x20x1xf32, #tpu.memory_space<vmem>>, vector<4x16x1xf32>
    %16 = arith.truncf %15 : vector<4x16x1xf32> to vector<4x16x1xbf16>
    %17 = arith.extf %16 : vector<4x16x1xbf16> to vector<4x16x1xf32>
    %c1_9 = arith.constant 1 : index
    %c0_10 = arith.constant 0 : index
    %c0_11 = arith.constant 0 : index
    %18 = vector.load %arg2[%c1_9, %c0_10, %c0_11] : memref<5x1x32xbf16, #tpu.memory_space<vmem>>, vector<1x1x32xbf16>
    %19 = vector.shape_cast %18 : vector<1x1x32xbf16> to vector<1x32xbf16>
    %20 = arith.extf %19 : vector<1x32xbf16> to vector<1x32xf32>
    %21 = vector.shape_cast %20 : vector<1x32xf32> to vector<1x1x32xf32>
    %22 = vector.broadcast %17 : vector<4x16x1xf32> to vector<4x16x32xf32>
    %23 = vector.broadcast %21 : vector<1x1x32xf32> to vector<4x16x32xf32>
    %24 = arith.mulf %22, %23 : vector<4x16x32xf32>
    %25 = arith.addf %14, %24 : vector<4x16x32xf32>
    %c0_12 = arith.constant 0 : index
    %c2 = arith.constant 2 : index
    %c0_13 = arith.constant 0 : index
    %26 = vector.load %arg1[%c0_12, %c2, %c0_13] : memref<4x20x1xf32, #tpu.memory_space<vmem>>, vector<4x16x1xf32>
    %27 = arith.truncf %26 : vector<4x16x1xf32> to vector<4x16x1xbf16>
    %28 = arith.extf %27 : vector<4x16x1xbf16> to vector<4x16x1xf32>
    %c2_14 = arith.constant 2 : index
    %c0_15 = arith.constant 0 : index
    %c0_16 = arith.constant 0 : index
    %29 = vector.load %arg2[%c2_14, %c0_15, %c0_16] : memref<5x1x32xbf16, #tpu.memory_space<vmem>>, vector<1x1x32xbf16>
    %30 = vector.shape_cast %29 : vector<1x1x32xbf16> to vector<1x32xbf16>
    %31 = arith.extf %30 : vector<1x32xbf16> to vector<1x32xf32>
    %32 = vector.shape_cast %31 : vector<1x32xf32> to vector<1x1x32xf32>
    %33 = vector.broadcast %28 : vector<4x16x1xf32> to vector<4x16x32xf32>
    %34 = vector.broadcast %32 : vector<1x1x32xf32> to vector<4x16x32xf32>
    %35 = arith.mulf %33, %34 : vector<4x16x32xf32>
    %36 = arith.addf %25, %35 : vector<4x16x32xf32>
    %c0_17 = arith.constant 0 : index
    %c3 = arith.constant 3 : index
    %c0_18 = arith.constant 0 : index
    %37 = vector.load %arg1[%c0_17, %c3, %c0_18] : memref<4x20x1xf32, #tpu.memory_space<vmem>>, vector<4x16x1xf32>
    %38 = arith.truncf %37 : vector<4x16x1xf32> to vector<4x16x1xbf16>
    %39 = arith.extf %38 : vector<4x16x1xbf16> to vector<4x16x1xf32>
    %c3_19 = arith.constant 3 : index
    %c0_20 = arith.constant 0 : index
    %c0_21 = arith.constant 0 : index
    %40 = vector.load %arg2[%c3_19, %c0_20, %c0_21] : memref<5x1x32xbf16, #tpu.memory_space<vmem>>, vector<1x1x32xbf16>
    %41 = vector.shape_cast %40 : vector<1x1x32xbf16> to vector<1x32xbf16>
    %42 = arith.extf %41 : vector<1x32xbf16> to vector<1x32xf32>
    %43 = vector.shape_cast %42 : vector<1x32xf32> to vector<1x1x32xf32>
    %44 = vector.broadcast %39 : vector<4x16x1xf32> to vector<4x16x32xf32>
    %45 = vector.broadcast %43 : vector<1x1x32xf32> to vector<4x16x32xf32>
    %46 = arith.mulf %44, %45 : vector<4x16x32xf32>
    %47 = arith.addf %36, %46 : vector<4x16x32xf32>
    %c0_22 = arith.constant 0 : index
    %c4 = arith.constant 4 : index
    %c0_23 = arith.constant 0 : index
    %48 = vector.load %arg1[%c0_22, %c4, %c0_23] : memref<4x20x1xf32, #tpu.memory_space<vmem>>, vector<4x16x1xf32>
    %49 = arith.truncf %48 : vector<4x16x1xf32> to vector<4x16x1xbf16>
    %50 = arith.extf %49 : vector<4x16x1xbf16> to vector<4x16x1xf32>
    %c4_24 = arith.constant 4 : index
    %c0_25 = arith.constant 0 : index
    %c0_26 = arith.constant 0 : index
    %51 = vector.load %arg2[%c4_24, %c0_25, %c0_26] : memref<5x1x32xbf16, #tpu.memory_space<vmem>>, vector<1x1x32xbf16>
    %52 = vector.shape_cast %51 : vector<1x1x32xbf16> to vector<1x32xbf16>
    %53 = arith.extf %52 : vector<1x32xbf16> to vector<1x32xf32>
    %54 = vector.shape_cast %53 : vector<1x32xf32> to vector<1x1x32xf32>
    %55 = vector.broadcast %50 : vector<4x16x1xf32> to vector<4x16x32xf32>
    %56 = vector.broadcast %54 : vector<1x1x32xf32> to vector<4x16x32xf32>
    %57 = arith.mulf %55, %56 : vector<4x16x32xf32>
    %58 = arith.addf %47, %57 : vector<4x16x32xf32>
    %c0_27 = arith.constant 0 : index
    %c0_28 = arith.constant 0 : index
    %c0_29 = arith.constant 0 : index
    %59 = vector.load %arg4[%c0_27, %c0_28, %c0_29] : memref<4x16x32xf32, #tpu.memory_space<vmem>>, vector<4x16x32xf32>
    tpu.vector_store %arg4[%c0_27, %c0_28, %c0_29], %58 {strides = array<i32>} : memref<4x16x32xf32, #tpu.memory_space<vmem>>, vector<4x16x32xf32>,
    %cst = arith.constant 0.000000e+00 : f32
    %60 = vector.broadcast %cst : f32 to vector<4x16x32xf32>
    %61 = arith.cmpf ogt, %58, %60 : vector<4x16x32xf32>
    %cst_30 = arith.constant 1.000000e-01 : f32
    %62 = vector.broadcast %cst_30 : f32 to vector<4x16x32xf32>
    %63 = arith.mulf %62, %58 : vector<4x16x32xf32>
    %64 = arith.select %61, %58, %63 : vector<4x16x32xi1>, vector<4x16x32xf32>
    %c0_31 = arith.constant 0 : index
    %c0_32 = arith.constant 0 : index
    %c0_33 = arith.constant 0 : index
    %65 = vector.load %arg5[%c0_31, %c0_32, %c0_33] : memref<4x16x32xf32, #tpu.memory_space<vmem>>, vector<4x16x32xf32>
    tpu.vector_store %arg5[%c0_31, %c0_32, %c0_33], %64 {strides = array<i32>} : memref<4x16x32xf32, #tpu.memory_space<vmem>>, vector<4x16x32xf32>,
    return
  }
  func.func @transform_0(%arg0: i32) -> (i32, i32, i32) {
    %c0_i32 = arith.constant 0 : i32
    %c0_i32_0 = arith.constant 0 : i32
    %c0_i32_1 = arith.constant 0 : i32
    return %arg0, %c0_i32, %c0_i32_0 : i32, i32, i32
  }
  func.func @transform_1(%arg0: i32) -> (i32, i32, i32) {
    %c0_i32 = arith.constant 0 : i32
    %c0_i32_0 = arith.constant 0 : i32
    %c0_i32_1 = arith.constant 0 : i32
    %c0_i32_2 = arith.constant 0 : i32
    return %c0_i32, %c0_i32_0, %c0_i32_1 : i32, i32, i32
  }
  func.func @transform_2(%arg0: i32) -> (i32, i32) {
    %c0_i32 = arith.constant 0 : i32
    %c0_i32_0 = arith.constant 0 : i32
    %c0_i32_1 = arith.constant 0 : i32
    return %c0_i32, %c0_i32_0 : i32, i32
  }
  func.func @transform_3(%arg0: i32) -> (i32, i32, i32) {
    %c0_i32 = arith.constant 0 : i32
    %c0_i32_0 = arith.constant 0 : i32
    %c0_i32_1 = arith.constant 0 : i32
    return %arg0, %c0_i32, %c0_i32_0 : i32, i32, i32
  }
  func.func @transform_4(%arg0: i32) -> (i32, i32, i32) {
    %c0_i32 = arith.constant 0 : i32
    %c0_i32_0 = arith.constant 0 : i32
    %c0_i32_1 = arith.constant 0 : i32
    return %arg0, %c0_i32, %c0_i32_0 : i32, i32, i32
  }
}

</mosaic_0001>

<bundles_post_ra>
// kernel: tpu_custom_call.1
= control target key start
LH: loop header
LB: loop body
LE: loop exit
PB: predicated region body
PF: predicated region fallthrough
CT: control target
= control target key end

     0   :  { %10 = vsyncpa [#allocation3], 0  ;;  %s1382_s0 = inlined_call_operand.vmem [shape: f32[8,20,1], index: 0, kind: input, shape index: {}]   ;;  %s1383_s1 = inlined_call_operand.vmem [shape: bf16[5,1,32], index: 1, kind: input, shape index: {}]   ;;  %s1384_s2 = inlined_call_operand.vmem [shape: f32[1,32], index: 2, kind: input, shape index: {}]   ;;  %s1385_s3 = inlined_call_operand.hbm [shape: f32[8,16,32], index: 3, kind: output, shape index: {0}]   ;;  %s1386_s4 = inlined_call_operand.hbm [shape: f32[8,16,32], index: 4, kind: output, shape index: {1}]  }
   0x1   :  { %12 = vsyncpa [#allocation3 + $0x1], 0 }
   0x2   :  { %13 = vsyncpa [#allocation5], 0 }
   0x3   :  { %15 = vsyncpa [#allocation5 + $0x1], 0  ;;  %s1106_s15 = smov 0   ;;  %s1108_s16 = smov 0  }
   0x4   :  { %s1110_s17 = smov 0   ;;  %s1112_s18 = smov 0  }
   0x5 LB: > { %s1127_s19 = sadd.s32 4294967295, %s1074_s18   ;;  %s807_s20 = sadd.s32 4294967294, %s1074_s18   ;;  %s1074_s18 = sphi %s1112_s18, %s1392_s18   ;;  %s1070_s17 = sphi %s1110_s17, %s1391_s17   ;;  %s1066_s16 = sphi %s1108_s16, %s1390_s16   ;;  %s1062_s15 = sphi %s1106_s15, %s1389_s15  }
   0x6   : > { %s1131_s21 = sadd.s32 1, %s1074_s18   ;;  %s96_s22 = sadd.s32 1, %s1070_s17 }
   0x7   : > { %s93_s23 = ssub.s32 %s1074_s18, %s1131_s21  ;;  %p106_p0 = scmp.ne.s32.totalorder %s1070_s17, %s1066_s16 }
   0x8   : > { %p94_p1 = scmp.eq.s32.totalorder %s93_s23, 0  ;;  %p107_p2 = scmp.eq.s32.totalorder %s1127_s19, 1 }
   0x9   : > { %p112_p3 = scmp.ne.s32.totalorder %s1066_s16, %s1062_s15  ;;  %p113_p4 = scmp.eq.s32.totalorder %s807_s20, 1 }
   0xa   : > { %s1142_s24 = scalar_select %p94_p1, %s1070_s17, %s96_s22  }
   0xb   : > { %p1144_p5 = por %p107_p2, %p106_p0  ;;  %p1148_p6 = por %p113_p4, %p112_p3 }
   0xc   : > { %p810_p7 = scmp.ge.s32.totalorder %s1074_s18, 1  ;;  %p173_p8 = scmp.lt.s32.totalorder %s1074_s18, 3 }
   0xe   : > { %p174_p9 = pnand %p810_p7, %p173_p8 }
   0xf   : > { %s813_s27 = sshll.u32 (!%p174_p9), %s1127_s19, 2  ;;  %s831_s29 = sshll.u32 (!%p174_p9), %s1127_s19, 10 }
  0x10   : > { %177 = sbr.rel (%p174_p9) target bundleno = 234 (0xea), region = 32  ;;  %p206_p10 = scmp.lt.s32.totalorder (!%p174_p9), %s813_s27, 7 }
  0x11   : > { %s1279_s9 = scalar_lea.hbm (!%p174_p9), %s1385_s3, %s831_s29  ;;  %s1301_s13 = scalar_lea.hbm (!%p174_p9), %s1386_s4, %s831_s29 }
  0x12   : > { %s1077_s22 = smov (!%p174_p9), [#allocation2]  }
  0x13   : > { %s988_s23 = sshll.u32 (!%p174_p9), %s1077_s22, 4  ;;  %s989_s23 = int_to_ptr.vmem [resolvable:$false] %s988_s23 }
  0x15   : > { %v1076_v0 = vmov 0   ;;  %s1394_s27 = smov (!%p206_p10, %s813_s27), 7  ;;  %v283_v61 = vlaneseq  ;;  %v241_v63 = vld [vmem:[%s1383_s1] sm:$0x1]  ;;  %vm635_vm0 = vcmask 261120  }
  0x16   : > { %893 = vset.pattern.permute.xlu1 %v1076_v0  ;;  %882 = vset.pattern.permute.xlu0 %v1076_v0  ;;  %s834_s28 = smul.u32 24, %s1394_s27  ;;  %s1237_s27 = sand.u32 1, %s1066_s16  }
  0x17   : > { %v284_v62 = vshrl.u32 %v283_v61, 7  ;;  %s677_s14 = scalar_lea.sflag [#allocation3], %s1237_s27 }
  0x18   : > { %s1158_s5 = scalar_lea.vmem %s1382_s0, %s834_s28  ;;  %s811_s28 = sshll.u32 %s1237_s27, 6 }
  0x19   : > { %v225_v1 = vld [vmem:[%s1158_s5 + $0x30] sm:$0xff]  ;;  %v226_v2 = vld [vmem:[%s1158_s5 + $0x38] sm:$0xff]  ;;  %v221_v3 = vld [vmem:[%s1158_s5] sm:$0xff]  ;;  %s1251_s30 = scalar_lea.vmem [#allocation2], %s811_s28  ;;  %s1266_s6 = scalar_lea.vmem [#allocation4], %s811_s28 }
  0x1a   : > { %v222_v4 = vld [vmem:[%s1158_s5 + $0x8] sm:$0xff]  ;;  %v228_v6 = vld [vmem:[%s1158_s5 + $0x50] sm:$0xff]  ;;  %v223_v7 = vld [vmem:[%s1158_s5 + $0x18] sm:$0xff]  ;;  %v894_v15 = vpack.i.bf16 %v226_v2, %v225_v1  ;;  %v242_v2 = vunpack.c.l.bf16 %v241_v63  ;;  %s713_s10 = sshll.u32 %s1266_s6, 4  ;;  %s990_s28 = scalar_lea.vmem %s989_s23, 2048  ;;  %s1303_s10 = int_to_ptr.vmem [resolvable:$true] %s713_s10 }
  0x1b   : > { %v227_v5 = vld [vmem:[%s1158_s5 + $0x48] sm:$0xff]  ;;  %v224_v8 = vld [vmem:[%s1158_s5 + $0x20] sm:$0xff]  ;;  %v310_v14 = vld [vmem:[%s1158_s5 + $0x51] sm:$0xff]  ;;  %v883_v18 = vpack.i.bf16 %v222_v4, %v221_v3  ;;  %v285_v3 = vsub.s32 0, %v284_v62 }
  0x1c   : > { %v305_v9 = vld [vmem:[%s1158_s5 + $0x19] sm:$0xff]  ;;  %v306_v10 = vld [vmem:[%s1158_s5 + $0x21] sm:$0xff]  ;;  %v304_v12 = vld [vmem:[%s1158_s5 + $0x9] sm:$0xff]  ;;  %895 = vperm.xlu1 %893, %v894_v15   ;;  %v899_v19 = vpack.i.bf16 %v228_v6, %v227_v5  ;;  %v888_v20 = vpack.i.bf16 %v224_v8, %v223_v7 }
  0x1d   : > { %v303_v11 = vld [vmem:[%s1158_s5 + $0x1] sm:$0xff]  ;;  %v309_v13 = vld [vmem:[%s1158_s5 + $0x49] sm:$0xff]  ;;  %v307_v16 = vld [vmem:[%s1158_s5 + $0x31] sm:$0xff]  ;;  %884 = vperm.xlu0 %882, %v883_v18   ;;  %v909_v25 = vpack.i.bf16 %v306_v10, %v305_v9  ;;  %v286_v8 = vrot.slane %v242_v2, %v285_v3 }
  0x1e   : > { %v308_v17 = vld [vmem:[%s1158_s5 + $0x39] sm:$0xff]  ;;  %v389_v22 = vld [vmem:[%s1158_s5 + $0x22] sm:$0xff]  ;;  %v387_v24 = vld [vmem:[%s1158_s5 + $0xa] sm:$0xff]  ;;  %v904_v26 = vpack.i.bf16 %v304_v12, %v303_v11  ;;  %v919_v31 = vpack.i.bf16 %v310_v14, %v309_v13 }
  0x1f   : > { %v388_v21 = vld [vmem:[%s1158_s5 + $0x1a] sm:$0xff]  ;;  %v386_v23 = vld [vmem:[%s1158_s5 + $0x2] sm:$0xff]  ;;  %v392_v27 = vld [vmem:[%s1158_s5 + $0x4a] sm:$0xff]  ;;  %v914_v32 = vpack.i.bf16 %v308_v17, %v307_v16 }
  0x20   : > { %900 = vperm.xlu1 %893, %v899_v19   ;;  %v393_v28 = vld [vmem:[%s1158_s5 + $0x52] sm:$0xff]  ;;  %v391_v30 = vld [vmem:[%s1158_s5 + $0x3a] sm:$0xff]  ;;  %v472_v34 = vld [vmem:[%s1158_s5 + $0x23] sm:$0xff]  ;;  %v929_v37 = vpack.i.bf16 %v389_v22, %v388_v21  ;;  %v924_v38 = vpack.i.bf16 %v387_v24, %v386_v23 }
  0x21   : > { %889 = vperm.xlu0 %882, %v888_v20   ;;  %v390_v29 = vld [vmem:[%s1158_s5 + $0x32] sm:$0xff]  ;;  %v471_v33 = vld [vmem:[%s1158_s5 + $0x1b] sm:$0xff]  ;;  %v469_v35 = vld [vmem:[%s1158_s5 + $0x3] sm:$0xff]  ;;  %v939_v43 = vpack.i.bf16 %v393_v28, %v392_v27 }
  0x22   : > { %v470_v36 = vld [vmem:[%s1158_s5 + $0xb] sm:$0xff]  ;;  %v476_v40 = vld [vmem:[%s1158_s5 + $0x53] sm:$0xff]  ;;  %v474_v42 = vld [vmem:[%s1158_s5 + $0x3b] sm:$0xff]  ;;  %v934_v44 = vpack.i.bf16 %v391_v30, %v390_v29  ;;  %v949_v49 = vpack.i.bf16 %v472_v34, %v471_v33 }
  0x23   : > { %v475_v39 = vld [vmem:[%s1158_s5 + $0x4b] sm:$0xff]  ;;  %v473_v41 = vld [vmem:[%s1158_s5 + $0x33] sm:$0xff]  ;;  %v554_v45 = vld [vmem:[%s1158_s5 + $0x1c] sm:$0xff]  ;;  %v944_v50 = vpack.i.bf16 %v470_v36, %v469_v35 }
  0x24   : > { %910 = vperm.xlu1 %893, %v909_v25   ;;  %v555_v46 = vld [vmem:[%s1158_s5 + $0x24] sm:$0xff]  ;;  %v553_v48 = vld [vmem:[%s1158_s5 + $0xc] sm:$0xff]  ;;  %v559_v52 = vld [vmem:[%s1158_s5 + $0x54] sm:$0xff]  ;;  %v959_v55 = vpack.i.bf16 %v476_v40, %v475_v39  ;;  %v954_v56 = vpack.i.bf16 %v474_v42, %v473_v41 }
  0x25   : > { %905 = vperm.xlu0 %882, %v904_v26   ;;  %v552_v47 = vld [vmem:[%s1158_s5 + $0x4] sm:$0xff]  ;;  %v558_v51 = vld [vmem:[%s1158_s5 + $0x4c] sm:$0xff]  ;;  %v556_v53 = vld [vmem:[%s1158_s5 + $0x34] sm:$0xff]  ;;  %v969_v57 = vpack.i.bf16 %v555_v46, %v554_v45 }
  0x26   : > { %v557_v54 = vld [vmem:[%s1158_s5 + $0x3c] sm:$0xff]  ;;  %v964_v58 = vpack.i.bf16 %v553_v48, %v552_v47  ;;  %v979_v59 = vpack.i.bf16 %v559_v52, %v558_v51  ;;  %v819_v12 = vld [vmem:[%s1383_s1 + $0x4] sm:$0x1]  ;;  %s696_s5 = sshll.u32 %s1251_s30, 4  ;;  %s1285_s5 = int_to_ptr.vmem [resolvable:$true] %s696_s5 }
  0x27   : > { %v974_v60 = vpack.i.bf16 %v557_v54, %v556_v53  ;;  %v816_v6 = vld [vmem:[%s1383_s1 + $0x1] sm:$0x1]  ;;  %v817_v7 = vld [vmem:[%s1383_s1 + $0x2] sm:$0x1]  ;;  %v818_v11 = vld [vmem:[%s1383_s1 + $0x3] sm:$0x1]  ;;  %v574_v20 = vunpack.c.l.bf16 %v819_v12  ;;  %p991_p0 = scmp.lt.s32.totalorder %s1285_s5, %s989_s23 }
  0x28   : > { %920 = vperm.xlu1 %893, %v919_v31   ;;  %v325_v16 = vunpack.c.l.bf16 %v816_v6  ;;  %v408_v18 = vunpack.c.l.bf16 %v817_v7  ;;  %v491_v19 = vunpack.c.l.bf16 %v818_v11  ;;  %v815_v25 = vld [vmem:[%s1384_s2] ss:$0 sm:$0xff]  ;;  %s984_s20 = scalar_lea.vmem %s1285_s5, 1024 }
  0x29   : > { %915 = vperm.xlu0 %882, %v914_v32   ;;  %v1222_v39 = vrot.slane %v574_v20, %v285_v3  ;;  %p985_p11 = scmp.ne.s32.totalorder %s1285_s5, %s984_s20  ;;  %p992_p1 = scmp.lt.s32.totalorder %s990_s28, %s984_s20 }
  0x2a   : > { %v369_v31 = vrot.slane %v325_v16, %v285_v3  ;;  %v1218_v35 = vrot.slane %v408_v18, %v285_v3 }
  0x2b   : > { %p986_p12 = pnand %p985_p11, %p1144_p5  ;;  %p993_p2 = por %p992_p1, %p991_p0 }
  0x2c   : > { %930 = vperm.xlu1 %893, %v929_v37  }
  0x2d   : > { %925 = vperm.xlu0 %882, %v924_v38   ;;  %v1220_v38 = vrot.slane %v491_v19, %v285_v3  ;;  %p987_p13 = pneg %p986_p12 }
  0x2f   : > { %p994_p3 = pnand %p993_p2, %p987_p13 }
  0x30   : > { %940 = vperm.xlu1 %893, %v939_v43  }
  0x31   : > { %935 = vperm.xlu0 %882, %v934_v44  }
  0x34   : > { %950 = vperm.xlu1 %893, %v949_v49  }
  0x35   : > { %945 = vperm.xlu0 %882, %v944_v50  }
  0x38   : > { %960 = vperm.xlu1 %893, %v959_v55  }
  0x39   : > { %955 = vperm.xlu0 %882, %v954_v56  }
  0x3c   : > { %970 = vperm.xlu1 %893, %v969_v57  }
  0x3d   : > { %965 = vperm.xlu0 %882, %v964_v58  }
  0x40   : > { %980 = vperm.xlu1 %893, %v979_v59  }
  0x41   : > { %975 = vperm.xlu0 %882, %v974_v60  }
  0x97   : > { %v896_v0 = vpop.permute.xlu1 %895 }
  0x98   : > { %v885_v1 = vpop.permute.xlu0 %884  ;;  %v898_v9 = vunpack.i.h.bf16 %v896_v0  ;;  %v897_v10 = vunpack.i.l.bf16 %v896_v0 }
  0x99   : > { %v887_v13 = vunpack.i.h.bf16 %v885_v1  ;;  %v886_v14 = vunpack.i.l.bf16 %v885_v1 }
  0x9a   : > { %v292_v21 = vmul.f32 %v898_v9, %v286_v8  ;;  %v291_v22 = vmul.f32 %v897_v10, %v286_v8 }
  0x9b   : > { %v901_v4 = vpop.permute.xlu1 %900  ;;  %v288_v26 = vmul.f32 %v887_v13, %v286_v8  ;;  %v287_v27 = vmul.f32 %v886_v14, %v286_v8 }
  0x9c   : > { %v890_v5 = vpop.permute.xlu0 %889  ;;  %v903_v28 = vunpack.i.h.bf16 %v901_v4  ;;  %v902_v29 = vunpack.i.l.bf16 %v901_v4  ;;  %v300_v40 = vadd.f32 %v815_v25, %v292_v21  ;;  %v299_v41 = vadd.f32 %v815_v25, %v291_v22 }
  0x9d   : > { %v892_v23 = vunpack.i.h.bf16 %v890_v5  ;;  %v891_v24 = vunpack.i.l.bf16 %v890_v5  ;;  %v296_v44 = vadd.f32 %v815_v25, %v288_v26  ;;  %v295_v45 = vadd.f32 %v815_v25, %v287_v27 }
  0x9e   : > { %v294_v46 = vmul.f32 %v903_v28, %v286_v8  ;;  %v293_v47 = vmul.f32 %v902_v29, %v286_v8 }
  0x9f   : > { %v911_v15 = vpop.permute.xlu1 %910  ;;  %v290_v42 = vmul.f32 %v892_v23, %v286_v8  ;;  %v289_v43 = vmul.f32 %v891_v24, %v286_v8 }
  0xa0   : > { %v906_v17 = vpop.permute.xlu0 %905  ;;  %v913_v32 = vunpack.i.h.bf16 %v911_v15  ;;  %v912_v33 = vunpack.i.l.bf16 %v911_v15  ;;  %v302_v62 = vadd.f32 %v815_v25, %v294_v46  ;;  %v301_v63 = vadd.f32 %v815_v25, %v293_v47 }
  0xa1   : > { %v908_v36 = vunpack.i.h.bf16 %v906_v17  ;;  %v907_v37 = vunpack.i.l.bf16 %v906_v17  ;;  %v298_v58 = vadd.f32 %v815_v25, %v290_v42  ;;  %v297_v59 = vadd.f32 %v815_v25, %v289_v43 }
  0xa2   : > { %v373_v49 = vmul.f32 %v913_v32, %v369_v31  ;;  %v372_v50 = vmul.f32 %v912_v33, %v369_v31 }
  0xa3   : > { %v921_v30 = vpop.permute.xlu1 %920  ;;  %v371_v54 = vmul.f32 %v908_v36, %v369_v31  ;;  %v370_v55 = vmul.f32 %v907_v37, %v369_v31 }
  0xa4   : > { %v916_v34 = vpop.permute.xlu0 %915  ;;  %v923_v51 = vunpack.i.h.bf16 %v921_v30  ;;  %v922_v52 = vunpack.i.l.bf16 %v921_v30  ;;  %v380_v3 = vadd.f32 %v372_v50, %v297_v59  ;;  %v381_v4 = vadd.f32 %v373_v49, %v298_v58 }
  0xa5   : > { %v918_v56 = vunpack.i.h.bf16 %v916_v34  ;;  %v917_v57 = vunpack.i.l.bf16 %v916_v34  ;;  %v378_v8 = vadd.f32 %v370_v55, %v295_v45  ;;  %v379_v9 = vadd.f32 %v371_v54, %v296_v44 }
  0xa6   : > { %v377_v5 = vmul.f32 %v923_v51, %v369_v31  ;;  %v376_v6 = vmul.f32 %v922_v52, %v369_v31 }
  0xa7   : > { %v931_v48 = vpop.permute.xlu1 %930  ;;  %v375_v10 = vmul.f32 %v918_v56, %v369_v31  ;;  %v374_v11 = vmul.f32 %v917_v57, %v369_v31 }
  0xa8   : > { %v926_v53 = vpop.permute.xlu0 %925  ;;  %v933_v60 = vunpack.i.h.bf16 %v931_v48  ;;  %v932_v61 = vunpack.i.l.bf16 %v931_v48  ;;  %v384_v21 = vadd.f32 %v376_v6, %v301_v63  ;;  %v385_v22 = vadd.f32 %v377_v5, %v302_v62 }
  0xa9   : > { %v928_v0 = vunpack.i.h.bf16 %v926_v53  ;;  %v927_v1 = vunpack.i.l.bf16 %v926_v53  ;;  %v383_v26 = vadd.f32 %v375_v10, %v300_v40  ;;  %v382_v27 = vadd.f32 %v374_v11, %v299_v41 }
  0xaa   : > { %v456_v12 = vmul.f32 %v933_v60, %v1218_v35  ;;  %v455_v13 = vmul.f32 %v932_v61, %v1218_v35 }
  0xab   : > { %v941_v2 = vpop.permute.xlu1 %940  ;;  %v454_v16 = vmul.f32 %v928_v0, %v1218_v35  ;;  %v453_v17 = vmul.f32 %v927_v1, %v1218_v35 }
  0xac   : > { %v936_v7 = vpop.permute.xlu0 %935  ;;  %v943_v14 = vunpack.i.h.bf16 %v941_v2  ;;  %v942_v15 = vunpack.i.l.bf16 %v941_v2  ;;  %v463_v30 = vadd.f32 %v455_v13, %v380_v3  ;;  %v464_v31 = vadd.f32 %v456_v12, %v381_v4 }
  0xad   : > { %v938_v18 = vunpack.i.h.bf16 %v936_v7  ;;  %v937_v19 = vunpack.i.l.bf16 %v936_v7  ;;  %v461_v34 = vadd.f32 %v453_v17, %v378_v8  ;;  %v462_v36 = vadd.f32 %v454_v16, %v379_v9 }
  0xae   : > { %v460_v32 = vmul.f32 %v943_v14, %v1218_v35  ;;  %v459_v33 = vmul.f32 %v942_v15, %v1218_v35 }
  0xaf   : > { %v951_v20 = vpop.permute.xlu1 %950  ;;  %v458_v37 = vmul.f32 %v938_v18, %v1218_v35  ;;  %v457_v42 = vmul.f32 %v937_v19, %v1218_v35 }
  0xb0   : > { %v953_v23 = vunpack.i.h.bf16 %v951_v20  ;;  %v952_v24 = vunpack.i.l.bf16 %v951_v20  ;;  %v946_v25 = vpop.permute.xlu0 %945  ;;  %v467_v51 = vadd.f32 %v459_v33, %v384_v21  ;;  %v468_v35 = vadd.f32 %v460_v32, %v385_v22 }
  0xb1   : > { %v948_v28 = vunpack.i.h.bf16 %v946_v25  ;;  %v947_v29 = vunpack.i.l.bf16 %v946_v25  ;;  %v465_v54 = vadd.f32 %v457_v42, %v382_v27  ;;  %v466_v55 = vadd.f32 %v458_v37, %v383_v26 }
  0xb2   : > { %v539_v40 = vmul.f32 %v953_v23, %v1220_v38  ;;  %v538_v41 = vmul.f32 %v952_v24, %v1220_v38 }
  0xb3   : > { %v961_v43 = vpop.permute.xlu1 %960  ;;  %v537_v47 = vmul.f32 %v948_v28, %v1220_v38  ;;  %v536_v48 = vmul.f32 %v947_v29, %v1220_v38 }
  0xb4   : > { %v963_v44 = vunpack.i.h.bf16 %v961_v43  ;;  %v962_v45 = vunpack.i.l.bf16 %v961_v43  ;;  %v956_v46 = vpop.permute.xlu0 %955  ;;  %v546_v59 = vadd.f32 %v538_v41, %v463_v30  ;;  %v547_v60 = vadd.f32 %v539_v40, %v464_v31 }
  0xb5   : > { %v958_v49 = vunpack.i.h.bf16 %v956_v46  ;;  %v957_v50 = vunpack.i.l.bf16 %v956_v46  ;;  %v544_v0 = vadd.f32 %v536_v48, %v461_v34  ;;  %v545_v1 = vadd.f32 %v537_v47, %v462_v36 }
  0xb6   : > { %v543_v52 = vmul.f32 %v963_v44, %v1220_v38  ;;  %v542_v53 = vmul.f32 %v962_v45, %v1220_v38 }
  0xb7   : > { %v541_v56 = vmul.f32 %v958_v49, %v1220_v38  ;;  %v540_v57 = vmul.f32 %v957_v50, %v1220_v38  ;;  %v971_v58 = vpop.permute.xlu1 %970 }
  0xb8   : > { %v973_v61 = vunpack.i.h.bf16 %v971_v58  ;;  %v972_v62 = vunpack.i.l.bf16 %v971_v58  ;;  %v966_v63 = vpop.permute.xlu0 %965  ;;  %v550_v4 = vadd.f32 %v542_v53, %v467_v51  ;;  %v551_v5 = vadd.f32 %v543_v52, %v468_v35 }
  0xb9   : > { %v968_v2 = vunpack.i.h.bf16 %v966_v63  ;;  %v967_v3 = vunpack.i.l.bf16 %v966_v63  ;;  %v548_v38 = vadd.f32 %v540_v57, %v465_v54  ;;  %v549_v8 = vadd.f32 %v541_v56, %v466_v55 }
  0xba   : > { %v622_v6 = vmul.f32 %v973_v61, %v1222_v39  ;;  %v621_v7 = vmul.f32 %v972_v62, %v1222_v39 }
  0xbb   : > { %v620_v9 = vmul.f32 %v968_v2, %v1222_v39  ;;  %v619_v10 = vmul.f32 %v967_v3, %v1222_v39  ;;  %v981_v11 = vpop.permute.xlu1 %980 }
  0xbc   : > { %v629_v12 = vadd.f32 %v621_v7, %v546_v59  ;;  %v630_v13 = vadd.f32 %v622_v6, %v547_v60  ;;  %v983_v14 = vunpack.i.h.bf16 %v981_v11  ;;  %v982_v15 = vunpack.i.l.bf16 %v981_v11  ;;  %v976_v16 = vpop.permute.xlu0 %975 }
  0xbd   : > { %v627_v17 = vadd.f32 %v619_v10, %v544_v0  ;;  %v628_v18 = vadd.f32 %v620_v9, %v545_v1  ;;  %v978_v19 = vunpack.i.h.bf16 %v976_v16  ;;  %v977_v20 = vunpack.i.l.bf16 %v976_v16 }
  0xbe   : > { %638 = vst.msk [vmem:[%s1251_s30 + $0x10] sm:$0xff] %vm635_vm0, %v629_v12  ;;  %639 = vst.msk [vmem:[%s1251_s30 + $0x18] sm:$0xff] %vm635_vm0, %v630_v13  ;;  %vm646_vm1 = vcmp.gt.f32.partialorder %v629_v12, 0.0  ;;  %vm647_vm2 = vcmp.gt.f32.partialorder %v630_v13, 0.0  ;;  %v654_v21 = vmul.f32 0.1, %v629_v12  ;;  %v626_v27 = vmul.f32 %v983_v14, %v1222_v39 }
  0xbf   : > { %v655_v22 = vmul.f32 0.1, %v630_v13  ;;  %636 = vst.msk [vmem:[%s1251_s30] sm:$0xff] %vm635_vm0, %v627_v17  ;;  %637 = vst.msk [vmem:[%s1251_s30 + $0x8] sm:$0xff] %vm635_vm0, %v628_v18  ;;  %vm644_vm3 = vcmp.gt.f32.partialorder %v627_v17, 0.0  ;;  %vm645_vm4 = vcmp.gt.f32.partialorder %v628_v18, 0.0  ;;  %v625_v28 = vmul.f32 %v982_v15, %v1222_v39 }
  0xc0   : > { %v652_v23 = vmul.f32 0.1, %v627_v17  ;;  %v653_v24 = vmul.f32 0.1, %v628_v18  ;;  %v662_v25 = vsel %vm646_vm1, %v629_v12, %v654_v21  ;;  %v624_v31 = vmul.f32 %v978_v19, %v1222_v39 }
  0xc1   : > { %v663_v26 = vsel %vm647_vm2, %v630_v13, %v655_v22  ;;  %670 = vst.msk [vmem:[%s1266_s6 + $0x10] sm:$0xff] %vm635_vm0, %v662_v25  ;;  %v623_v32 = vmul.f32 %v977_v20, %v1222_v39  ;;  %v633_v33 = vadd.f32 %v625_v28, %v550_v4  ;;  %v634_v34 = vadd.f32 %v626_v27, %v551_v5 }
  0xc2   : > { %671 = vst.msk [vmem:[%s1266_s6 + $0x18] sm:$0xff] %vm635_vm0, %v663_v26  ;;  %v660_v29 = vsel %vm644_vm3, %v627_v17, %v652_v23  ;;  %v661_v30 = vsel %vm645_vm4, %v628_v18, %v653_v24  ;;  %v632_v39 = vadd.f32 %v624_v31, %v549_v8 }
  0xc3   : > { %668 = vst.msk [vmem:[%s1266_s6] sm:$0xff] %vm635_vm0, %v660_v29  ;;  %669 = vst.msk [vmem:[%s1266_s6 + $0x8] sm:$0xff] %vm635_vm0, %v661_v30  ;;  %v631_v36 = vadd.f32 %v623_v32, %v548_v38  ;;  %vm650_vm5 = vcmp.gt.f32.partialorder %v633_v33, 0.0  ;;  %vm651_vm6 = vcmp.gt.f32.partialorder %v634_v34, 0.0  ;;  %v658_v37 = vmul.f32 0.1, %v633_v33 }
  0xc4   : > { %642 = vst.msk [vmem:[%s1251_s30 + $0x30] sm:$0xff] %vm635_vm0, %v633_v33  ;;  %643 = vst.msk [vmem:[%s1251_s30 + $0x38] sm:$0xff] %vm635_vm0, %v634_v34  ;;  %v659_v42 = vmul.f32 0.1, %v634_v34  ;;  %vm649_vm8 = vcmp.gt.f32.partialorder %v632_v39, 0.0 }
  0xc5   : > { %640 = vst.msk [vmem:[%s1251_s30 + $0x20] sm:$0xff] %vm635_vm0, %v631_v36  ;;  %641 = vst.msk [vmem:[%s1251_s30 + $0x28] sm:$0xff] %vm635_vm0, %v632_v39  ;;  %vm648_vm7 = vcmp.gt.f32.partialorder %v631_v36, 0.0  ;;  %v656_v43 = vmul.f32 0.1, %v631_v36  ;;  %v666_v41 = vsel %vm650_vm5, %v633_v33, %v658_v37 }
  0xc6   : > { %v657_v40 = vmul.f32 0.1, %v632_v39  ;;  %v667_v44 = vsel %vm651_vm6, %v634_v34, %v659_v42 }
  0xc7   : > { %997 = shalt.err (!%p994_p3)
}
  0xc8   : > { %s998_s19 = scalar_lea.hbm %s1279_s9, 1024  ;;  %s1002_s7 = scalar_lea.hbm %s1385_s3, 2048 }
  0xc9   : > { %p999_p4 = scmp.ne.s32.totalorder %s1279_s9, %s998_s19  ;;  %p1003_p9 = scmp.lt.s32.totalorder %s1279_s9, %s1385_s3 }
  0xca   : > { %p1004_p10 = scmp.lt.s32.totalorder %s1002_s7, %s998_s19 }
  0xcb   : > { %p1000_p7 = pnand %p999_p4, %p1144_p5 }
  0xcc   : > { %p1005_p11 = por %p1004_p10, %p1003_p9 }
  0xcd   : > { %p1001_p8 = pneg %p1000_p7 }
  0xcf   : > { %p1006_p12 = pnand %p1005_p11, %p1001_p8 }
  0xd1   : > { %1009 = shalt.err (!%p1006_p12)
}
  0xd2   : > { %s1078_s12 = smov 128   ;;  %s1079_s20 = smov 8   ;;  %674 = vst.msk [vmem:[%s1266_s6 + $0x30] sm:$0xff] %vm635_vm0, %v666_v41  ;;  %675 = vst.msk [vmem:[%s1266_s6 + $0x38] sm:$0xff] %vm635_vm0, %v667_v44  ;;  %v664_v45 = vsel %vm648_vm7, %v631_v36, %v656_v43  ;;  %v665_v46 = vsel %vm649_vm8, %v632_v39, %v657_v40 }
  0xd3   : > { %835 = dma.vmem_to_hbm [thread:$0]  (%p1144_p5), %s1285_s5, 1024, %s1279_s9, %s677_s14, %s1078_s12, %s1078_s12, %s1079_s20  }
  0xd4   : > { %672 = vst.msk [vmem:[%s1266_s6 + $0x20] sm:$0xff] %vm635_vm0, %v664_v45  ;;  %673 = vst.msk [vmem:[%s1266_s6 + $0x28] sm:$0xff] %vm635_vm0, %v665_v46  ;;  %s682_s22 = scalar_lea.sflag [#allocation5], %s1237_s27  ;;  %s1010_s23 = scalar_lea.vmem %s1303_s10, 1024 }
  0xd5   : > { %p1011_p13 = scmp.ne.s32.totalorder %s1303_s10, %s1010_s23  ;;  %s1080_s5 = smov [#allocation4]  }
  0xd6   : > { %s1014_s9 = sshll.u32 %s1080_s5, 4  ;;  %s1015_s9 = int_to_ptr.vmem [resolvable:$false] %s1014_s9 }
  0xd7   : > { %p1012_p0 = pnand %p1011_p13, %p1144_p5  ;;  %s1016_s14 = scalar_lea.vmem %s1015_s9, 2048 }
  0xd8   : > { %p1017_p2 = scmp.lt.s32.totalorder %s1303_s10, %s1015_s9  ;;  %p1018_p3 = scmp.lt.s32.totalorder %s1016_s14, %s1010_s23 }
  0xd9   : > { %p1013_p1 = pneg %p1012_p0 }
  0xda   : > { %p1019_p4 = por %p1018_p3, %p1017_p2 }
  0xdc   : > { %p1020_p7 = pnand %p1019_p4, %p1013_p1 }
  0xde   : > { %1023 = shalt.err (!%p1020_p7)
}
  0xdf   : > { %s1024_s6 = scalar_lea.hbm %s1301_s13, 1024  ;;  %s1028_s19 = scalar_lea.hbm %s1386_s4, 2048 }
  0xe0   : > { %p1025_p8 = scmp.ne.s32.totalorder %s1301_s13, %s1024_s6  ;;  %p1029_p11 = scmp.lt.s32.totalorder %s1301_s13, %s1386_s4 }
  0xe1   : > { %p1030_p12 = scmp.lt.s32.totalorder %s1028_s19, %s1024_s6 }
  0xe2   : > { %p1026_p9 = pnand %p1025_p8, %p1144_p5 }
  0xe3   : > { %p1031_p13 = por %p1030_p12, %p1029_p11 }
  0xe4   : > { %p1027_p10 = pneg %p1026_p9 }
  0xe6   : > { %p1032_p0 = pnand %p1031_p13, %p1027_p10 }
  0xe8   : > { %1035 = shalt.err (!%p1032_p0)
}
  0xe9   : > { %836 = dma.vmem_to_hbm [thread:$0]  (%p1144_p5), %s1303_s10, 1024, %s1301_s13, %s682_s22, %s1078_s12, %s1078_s12, %s1079_s20  }
  0xea PF: > { %p846_p1 = scmp.ge.s32.totalorder %s1074_s18, 2  ;;  %s728_s7 = sand.u32 1, %s1062_s15  }
  0xeb   : > { %s729_s8 = scalar_lea.sflag [#allocation3], %s728_s7 }
  0xec   : > { %p840_p2 = pnand %p846_p1, %p1148_p6 }
  0xee   : > { %p841_p3 = pneg %p840_p2 }
  0xf0   : > { %1053 = dma.done.wait (%p841_p3), %s729_s8, 1024  }
  0xf1   : > { %1055 = vsyncadd (%p841_p3), %s729_s8, 4294966272  ;;  %s738_s11 = scalar_lea.sflag [#allocation5], %s728_s7 }
  0xf2   : > { %1057 = dma.done.wait (%p841_p3), %s738_s11, 1024  }
  0xf3   : > { %1059 = vsyncadd (%p841_p3), %s738_s11, 4294966272  ;;  %p18_p5 = scmp.ge.s32.totalorder %s1131_s21, 4   ;;  %s1389_s15 = smov %s1066_s16 }
  0xf4   : > { %s1390_s16 = smov %s1070_s17  ;;  %s1391_s17 = smov %s1142_s24 }
  0xf5   : > { %s1392_s18 = smov %s1131_s21  ;;  %20 = sbr.rel (!%p18_p5) target bundleno = 5 (0x5), region = 88 }
  0xfa   :  { %743 = vsyncpa [#allocation3], 1 }
  0xfb   :  { %745 = vsyncpa [#allocation3 + $0x1], 1 }
  0xfc   :  { %746 = vsyncpa [#allocation5], 1 }
  0xfd   :  { %748 = vsyncpa [#allocation5 + $0x1], 1 }

</bundles_post_ra>
